<compile_context>
chip_gen: v7x
topology: tpu7x:2x2x1
jax: 0.10.0
libtpu: 0.0.40
codegen_flags: <defaults>
</compile_context>

<pallas_src>
import functools

import jax
import jax.numpy as jnp
from jax import lax
from jax.experimental import pallas as pl
from jax.experimental.pallas import tpu as pltpu


def _res_block_kernel(x_ref, w1_ref, b1_ref, w2_ref, b2_ref, o_ref, *, H, W, C, TH):
    """One (batch, row-tile) grid step.

    x_ref : (1, H+4, (W+2)*C) bf16  zero-padded NHWC input, width*chan on the lane axis
    w1_ref: (3, (W+2)*C, W*C) bf16  conv1 banded weights (BN1 scale folded), one per kh
    b1_ref: (1, W*C)          f32   BN1 shift, tiled over width
    w2_ref: (3, (W+2)*C, W*C) bf16  conv2 banded weights (BN2 scale folded)
    b2_ref: (1, W*C)          f32   BN2 shift, tiled over width
    o_ref : (1, TH, W*C)      f32   output row tile (lane dim = W*C)
    """
    WC = W * C
    R1 = TH + 2                             # conv1 rows needed (1-row halo for conv2)
    t = pl.program_id(1)
    row0 = pl.multiple_of(t * TH, TH)       # first output row of this tile (TH | H)

    # (TH+4)-row halo window of the padded input; stays bf16 for the MXU.
    xw = x_ref[0, pl.ds(row0, TH + 4), :]                       # (TH+4, (W+2)*C)

    # ---- conv1: 3 row-shifted banded matmuls (bf16 operands, f32 accumulation) ----
    acc1 = jnp.dot(xw[0:R1, :], w1_ref[0], preferred_element_type=jnp.float32)
    for dy in (1, 2):                                           # static unroll
        acc1 = acc1 + jnp.dot(xw[dy:dy + R1, :], w1_ref[dy],
                              preferred_element_type=jnp.float32)
    out1 = jnp.maximum(acc1 + b1_ref[0], 0.0)                   # BN1 shift + ReLU

    # conv1 halo rows that fall outside the image are conv2's zero SAME padding.
    row_ids = lax.broadcasted_iota(jnp.int32, (R1, 1), 0) + (row0 - 1)
    out1 = jnp.where((row_ids >= 0) & (row_ids < H), out1, 0.0)

    # Column zero-halo for conv2, back to bf16 for the MXU (one small lane concat).
    out1_bf = out1.astype(jnp.bfloat16)
    zc = jnp.zeros((R1, C), jnp.bfloat16)
    out1_p = jnp.concatenate([zc, out1_bf, zc], axis=-1)        # (R1, (W+2)*C)

    # ---- conv2 (no activation): 3 row-shifted banded matmuls + BN2 shift ----
    acc2 = jnp.dot(out1_p[0:TH, :], w2_ref[0], preferred_element_type=jnp.float32)
    for dy in (1, 2):
        acc2 = acc2 + jnp.dot(out1_p[dy:dy + TH, :], w2_ref[dy],
                              preferred_element_type=jnp.float32)
    out2 = acc2 + b2_ref[0]

    # ---- identity residual (upcast only this slice to f32) + final ReLU ----
    res = xw[2:2 + TH, C:C + WC].astype(jnp.float32)
    out = jnp.maximum(out2 + res, 0.0)                          # (TH, W*C)

    # Lane-dense row store: W*C lanes wide (vs C=4 before); no relayout needed.
    o_ref[...] = out.reshape(1, TH, WC).astype(o_ref.dtype)


def _fold_bn(gamma, beta, mean, var, eps=1e-5):
    scale = gamma / jnp.sqrt(var + eps)
    shift = beta - mean * scale
    return scale, shift


def _banded_conv_weights(w_hwio, w_img):
    """(3,3,Cin,Cout) HWIO taps -> 3 banded matrices ((W+2)*Cin, W*Cout), one per kh.

    banded[dy][wp*Cin + ci, w*Cout + co] = w_hwio[dy, wp - w, ci, co] (0 elsewhere), so
    a whole padded row (lane axis = (W+2)*Cin) hits the MXU in ONE matmul per dy: no
    per-tap slice / reshape / concatenate relayout inside the kernel.
    """
    kh, kw, cin, cout = w_hwio.shape
    wp = jnp.arange(w_img + 2)
    w = jnp.arange(w_img)
    dx = jnp.arange(kw)
    sel = (wp[None, None, :] == (w[None, :, None] + dx[:, None, None]))
    sel = sel.astype(w_hwio.dtype)                              # (kw, W, W+2)
    banded = jnp.einsum("xwp,yxic->ypiwc", sel, w_hwio)         # (kh, W+2, Cin, W, Cout)
    return banded.reshape(kh, (w_img + 2) * cin, w_img * cout)


def _pick_row_tile(n, h, w):
    """Row-tile height heuristic: first make the grid long enough to software-pipeline
    and feed both v7x TensorCores (>= 4 steps), then prefer an MXU-friendly TH*W
    (256-multiple for v6e/v7x, 128 for v5e), then the largest tile (fewer ~0.35us
    fixed per-step costs)."""
    divisors = [d for d in range(1, h + 1) if h % d == 0]

    def score(th):
        steps = n * (h // th)
        m = th * w
        return (steps >= 4, m % 256 == 0, m % 128 == 0, th)

    return max(divisors, key=score)


def _vmem_limit_bytes():
    """Generation-aware scoped-VMEM budget: ~96 MiB on the 128 MiB parts (v5e/v6e),
    ~48 MiB on v7x's 64 MiB, instead of a hard-coded 32 MiB."""
    cap = 128 * 1024 * 1024
    try:
        cap = int(getattr(pltpu.get_tpu_info(), "vmem_capacity_bytes", cap))
    except Exception:  # pragma: no cover - interpret mode / older runtimes
        pass
    return int(min(cap * 3 // 4, 96 * 1024 * 1024))


def res_block_pallas(x_nhwc, params, *, row_tile=None):
    """NHWC-native entry point: x_nhwc (N, H, W, Cin) f32 -> (N, H, W, C) f32."""
    N, H, W, Cin = x_nhwc.shape
    C = params["w1"].shape[-1]
    assert Cin == C, "identity shortcut requires inplanes == planes (stride 1)"

    TH = row_tile if row_tile is not None else _pick_row_tile(N, H, W)
    if H % TH:
        TH = H
    T = H // TH
    WC = W * C

    # bf16 cast + halo pad (2 rows / 1 col) in one half-width HBM pass; flattening
    # (W+2, Cin) onto the lane axis is a contiguous (metadata-only) reshape.
    x_pad = jnp.pad(x_nhwc.astype(jnp.bfloat16), ((0, 0), (2, 2), (1, 1), (0, 0)))
    x_pad = x_pad.reshape(N, H + 4, (W + 2) * Cin)

    s1, b1 = _fold_bn(params["g1"], params["be1"], params["m1"], params["v1"])
    s2, b2 = _fold_bn(params["g2"], params["be2"], params["m2"], params["v2"])
    # BN scales folded into the conv weights (per output channel); shifts stay f32.
    w1b = _banded_conv_weights(params["w1"] * s1, W).astype(jnp.bfloat16)
    w2b = _banded_conv_weights(params["w2"] * s2, W).astype(jnp.bfloat16)
    b1t = jnp.tile(b1, W).reshape(1, WC).astype(jnp.float32)
    b2t = jnp.tile(b2, W).reshape(1, WC).astype(jnp.float32)

    kernel = functools.partial(_res_block_kernel, H=H, W=W, C=C, TH=TH)

    out = pl.pallas_call(
        kernel,
        out_shape=jax.ShapeDtypeStruct((N, H, WC), jnp.float32),
        grid_spec=pltpu.PrefetchScalarGridSpec(
            num_scalar_prefetch=0,
            grid=(N, T),
            in_specs=[
                # Full padded image per batch element (tiny at small C); the block
                # index ignores t so it is re-DMA'd only when n changes.
                # TODO(synk): halo-windowed (TH+4)-row blocks for production/v7x.
                pl.BlockSpec((1, H + 4, (W + 2) * Cin), lambda n, t: (n, 0, 0)),
                pl.BlockSpec((3, (W + 2) * C, WC), lambda n, t: (0, 0, 0)),
                pl.BlockSpec((1, WC), lambda n, t: (0, 0)),
                pl.BlockSpec((3, (W + 2) * C, WC), lambda n, t: (0, 0, 0)),
                pl.BlockSpec((1, WC), lambda n, t: (0, 0)),
            ],
            out_specs=pl.BlockSpec((1, TH, WC), lambda n, t: (n, t, 0)),
        ),
        compiler_params=pltpu.CompilerParams(
            dimension_semantics=("parallel", "parallel"),
            vmem_limit_bytes=_vmem_limit_bytes(),
        ),
    )(x_pad, w1b, b1t, w2b, b2t)

    # (N, H, W*C) -> (N, H, W, C): contiguous, metadata-only reshape (no HBM pass).
    return out.reshape(N, H, W, C)


def res_block_pallas_nchw(x_nchw, params, **kw):
    """Convenience adapter matching the PyTorch NCHW convention.  The transposes cost
    two extra HBM passes; production callers should use the NHWC entry point."""
    out = res_block_pallas(jnp.transpose(x_nchw, (0, 2, 3, 1)), params, **kw)
    return jnp.transpose(out, (0, 3, 1, 2))


def res_block_reference(x_nhwc, params):
    """Pure-JAX NHWC reference with the same bf16-operand / f32-accumulate math."""
    dn = ("NHWC", "HWIO", "NHWC")
    s1, b1 = _fold_bn(params["g1"], params["be1"], params["m1"], params["v1"])
    s2, b2 = _fold_bn(params["g2"], params["be2"], params["m2"], params["v2"])
    w1 = (params["w1"] * s1).astype(jnp.bfloat16)
    w2 = (params["w2"] * s2).astype(jnp.bfloat16)
    xb = x_nhwc.astype(jnp.bfloat16)

    h = lax.conv_general_dilated(xb, w1, (1, 1), "SAME", dimension_numbers=dn,
                                 preferred_element_type=jnp.float32)
    h = jnp.maximum(h + b1, 0.0)
    h = lax.conv_general_dilated(h.astype(jnp.bfloat16), w2, (1, 1), "SAME",
                                 dimension_numbers=dn,
                                 preferred_element_type=jnp.float32)
    h = h + b2
    return jnp.maximum(h + xb.astype(jnp.float32), 0.0)


def make_params(key, inplanes, planes):
    ks = jax.random.split(key, 10)
    fan1 = inplanes * 9
    fan2 = planes * 9
    # conv weights generated in PyTorch (Cout, Cin, kh, kw) order, then moved to HWIO
    w1 = jax.random.normal(ks[0], (planes, inplanes, 3, 3), jnp.float32) / jnp.sqrt(fan1)
    w2 = jax.random.normal(ks[1], (planes, planes, 3, 3), jnp.float32) / jnp.sqrt(fan2)
    return {
        "w1": jnp.transpose(w1, (2, 3, 1, 0)),   # (3, 3, Cin, Cout)
        "w2": jnp.transpose(w2, (2, 3, 1, 0)),
        "g1": 0.5 + jax.random.uniform(ks[2], (planes,), jnp.float32),
        "be1": 0.1 * jax.random.normal(ks[3], (planes,), jnp.float32),
        "m1": 0.1 * jax.random.normal(ks[4], (planes,), jnp.float32),
        "v1": 0.5 + jax.random.uniform(ks[5], (planes,), jnp.float32),
        "g2": 0.5 + jax.random.uniform(ks[6], (planes,), jnp.float32),
        "be2": 0.1 * jax.random.normal(ks[7], (planes,), jnp.float32),
        "m2": 0.1 * jax.random.normal(ks[8], (planes,), jnp.float32),
        "v2": 0.5 + jax.random.uniform(ks[9], (planes,), jnp.float32),
    }


if __name__ == "__main__":
    key = jax.random.PRNGKey(0)
    kx, kp = jax.random.split(key)

    N, C, H, W = 2, 4, 16, 16              # inplanes == planes == 4, stride 1
    x_nchw = jax.random.normal(kx, (N, C, H, W), jnp.float32)   # PyTorch-layout data
    params = make_params(kp, C, C)

    # NHWC is the kernel's native layout (no per-call transpose HBM passes).
    x_nhwc = jnp.transpose(x_nchw, (0, 2, 3, 1))

    out = jax.block_until_ready(res_block_pallas(x_nhwc, params))
    ref = res_block_reference(x_nhwc, params)
    assert out.shape == (N, H, W, C)
    # bf16 MXU operands with f32 accumulation: allow small rounding differences.
    assert jnp.allclose(out, ref, rtol=2e-2, atol=2e-2), "mismatch vs JAX reference"

    # NCHW adapter preserves the original PyTorch convention end-to-end.
    out_nchw = jax.block_until_ready(res_block_pallas_nchw(x_nchw, params))
    assert jnp.allclose(out_nchw, jnp.transpose(ref, (0, 3, 1, 2)),
                        rtol=2e-2, atol=2e-2), "NCHW adapter mismatch"

    print("KERNEL_OK")
</pallas_src>

<mosaic_0001>
module attributes {stable_mosaic.version = 11 : i64} {
  func.func @_res_block_kernel(%arg0: i32, %arg1: i32, %arg2: memref<1x20x72xbf16, #tpu.memory_space<vmem>>, %arg3: memref<3x72x64xbf16, #tpu.memory_space<vmem>>, %arg4: memref<1x64xf32, #tpu.memory_space<vmem>>, %arg5: memref<3x72x64xbf16, #tpu.memory_space<vmem>>, %arg6: memref<1x64xf32, #tpu.memory_space<vmem>>, %arg7: memref<1x8x64xf32, #tpu.memory_space<vmem>>) attributes {dimension_semantics = [#tpu.dimension_semantics<parallel>, #tpu.dimension_semantics<parallel>], iteration_bounds = array<i64: 2, 2>, scalar_prefetch = 0 : i64, scratch_operands = 0 : i64, tpu.core_type = #tpu.core_type<tc>, window_params = [{transform_indices = @transform_0, window_bounds = array<i64: 1, 20, 72>}, {pipeline_mode = #tpu.pipeline_mode<synchronous>, transform_indices = @transform_1, window_bounds = array<i64: 3, 72, 64>}, {pipeline_mode = #tpu.pipeline_mode<synchronous>, transform_indices = @transform_2, window_bounds = array<i64: 1, 64>}, {pipeline_mode = #tpu.pipeline_mode<synchronous>, transform_indices = @transform_3, window_bounds = array<i64: 3, 72, 64>}, {pipeline_mode = #tpu.pipeline_mode<synchronous>, transform_indices = @transform_4, window_bounds = array<i64: 1, 64>}, {transform_indices = @transform_5, window_bounds = array<i64: 1, 8, 64>}]} {
    %c8_i32 = arith.constant 8 : i32
    %0 = arith.muli %arg1, %c8_i32 : i32
    %1 = tpu.assume_multiple %0, 8 : i32
    %c0 = arith.constant 0 : index
    %2 = arith.index_cast %1 : i32 to index
    %c0_0 = arith.constant 0 : index
    %3 = vector.load %arg2[%c0, %2, %c0_0] : memref<1x20x72xbf16, #tpu.memory_space<vmem>>, vector<1x12x72xbf16>
    %4 = vector.shape_cast %3 : vector<1x12x72xbf16> to vector<12x72xbf16>
    %5 = vector.extract_strided_slice %4 {offsets = [0, 0], sizes = [10, 72], strides = [1, 1]} : vector<12x72xbf16> to vector<10x72xbf16>
    %c0_1 = arith.constant 0 : index
    %c0_2 = arith.constant 0 : index
    %c0_3 = arith.constant 0 : index
    %6 = vector.load %arg3[%c0_1, %c0_2, %c0_3] : memref<3x72x64xbf16, #tpu.memory_space<vmem>>, vector<1x72x64xbf16>
    %7 = vector.shape_cast %6 : vector<1x72x64xbf16> to vector<72x64xbf16>
    %cst = arith.constant dense<0.000000e+00> : vector<10x64xf32>
    %8 = tpu.matmul %5, %7, %cst {dimension_numbers = #tpu.dot_dimension_numbers<[1], [0], [0], [1], [0, 0, 1, 1], [], []>} : vector<10x72xbf16>, vector<72x64xbf16>, vector<10x64xf32> -> vector<10x64xf32>
    %9 = vector.extract_strided_slice %4 {offsets = [1, 0], sizes = [10, 72], strides = [1, 1]} : vector<12x72xbf16> to vector<10x72xbf16>
    %c1 = arith.constant 1 : index
    %c0_4 = arith.constant 0 : index
    %c0_5 = arith.constant 0 : index
    %10 = vector.load %arg3[%c1, %c0_4, %c0_5] : memref<3x72x64xbf16, #tpu.memory_space<vmem>>, vector<1x72x64xbf16>
    %11 = vector.shape_cast %10 : vector<1x72x64xbf16> to vector<72x64xbf16>
    %cst_6 = arith.constant dense<0.000000e+00> : vector<10x64xf32>
    %12 = tpu.matmul %9, %11, %cst_6 {dimension_numbers = #tpu.dot_dimension_numbers<[1], [0], [0], [1], [0, 0, 1, 1], [], []>} : vector<10x72xbf16>, vector<72x64xbf16>, vector<10x64xf32> -> vector<10x64xf32>
    %13 = arith.addf %8, %12 : vector<10x64xf32>
    %14 = vector.extract_strided_slice %4 {offsets = [2, 0], sizes = [10, 72], strides = [1, 1]} : vector<12x72xbf16> to vector<10x72xbf16>
    %c2 = arith.constant 2 : index
    %c0_7 = arith.constant 0 : index
    %c0_8 = arith.constant 0 : index
    %15 = vector.load %arg3[%c2, %c0_7, %c0_8] : memref<3x72x64xbf16, #tpu.memory_space<vmem>>, vector<1x72x64xbf16>
    %16 = vector.shape_cast %15 : vector<1x72x64xbf16> to vector<72x64xbf16>
    %cst_9 = arith.constant dense<0.000000e+00> : vector<10x64xf32>
    %17 = tpu.matmul %14, %16, %cst_9 {dimension_numbers = #tpu.dot_dimension_numbers<[1], [0], [0], [1], [0, 0, 1, 1], [], []>} : vector<10x72xbf16>, vector<72x64xbf16>, vector<10x64xf32> -> vector<10x64xf32>
    %18 = arith.addf %13, %17 : vector<10x64xf32>
    %c0_10 = arith.constant 0 : index
    %c0_11 = arith.constant 0 : index
    %19 = vector.load %arg4[%c0_10, %c0_11] : memref<1x64xf32, #tpu.memory_space<vmem>>, vector<1x64xf32>
    %20 = vector.shape_cast %19 : vector<1x64xf32> to vector<64xf32>
    %21 = vector.shape_cast %20 : vector<64xf32> to vector<1x64xf32>
    %22 = vector.broadcast %21 : vector<1x64xf32> to vector<10x64xf32>
    %23 = arith.addf %18, %22 : vector<10x64xf32>
    %cst_12 = arith.constant 0.000000e+00 : f32
    %24 = vector.broadcast %cst_12 : f32 to vector<10x64xf32>
    %25 = arith.maximumf %23, %24 : vector<10x64xf32>
    %26 = tpu.iota {dimensions = array<i32: 0>} : vector<10x1xi32>
    %c1_i32 = arith.constant 1 : i32
    %27 = arith.subi %1, %c1_i32 : i32
    %28 = vector.broadcast %27 : i32 to vector<10x1xi32>
    %29 = arith.addi %26, %28 : vector<10x1xi32>
    %c0_i32 = arith.constant 0 : i32
    %30 = vector.broadcast %c0_i32 : i32 to vector<10x1xi32>
    %31 = arith.cmpi sge, %29, %30 : vector<10x1xi32>
    %c16_i32 = arith.constant 16 : i32
    %32 = vector.broadcast %c16_i32 : i32 to vector<10x1xi32>
    %33 = arith.cmpi slt, %29, %32 : vector<10x1xi32>
    %34 = arith.andi %31, %33 : vector<10x1xi1>
    %cst_13 = arith.constant 0.000000e+00 : f32
    %35 = vector.shape_cast %34 : vector<10x1xi1> to vector<10x1xi1>
    %36 = vector.broadcast %35 : vector<10x1xi1> to vector<10x64xi1>
    %37 = vector.broadcast %cst_13 : f32 to vector<10x64xf32>
    %38 = arith.select %36, %25, %37 : vector<10x64xi1>, vector<10x64xf32>
    %39 = arith.truncf %38 : vector<10x64xf32> to vector<10x64xbf16>
    %cst_14 = arith.constant 0.000000e+00 : bf16
    %40 = vector.broadcast %cst_14 : bf16 to vector<10x4xbf16>
    %41 = tpu.concatenate %40, %39, %40 in 1 : vector<10x4xbf16>, vector<10x64xbf16>, vector<10x4xbf16> -> vector<10x72xbf16>
    %42 = vector.extract_strided_slice %41 {offsets = [0, 0], sizes = [8, 72], strides = [1, 1]} : vector<10x72xbf16> to vector<8x72xbf16>
    %c0_15 = arith.constant 0 : index
    %c0_16 = arith.constant 0 : index
    %c0_17 = arith.constant 0 : index
    %43 = vector.load %arg5[%c0_15, %c0_16, %c0_17] : memref<3x72x64xbf16, #tpu.memory_space<vmem>>, vector<1x72x64xbf16>
    %44 = vector.shape_cast %43 : vector<1x72x64xbf16> to vector<72x64xbf16>
    %cst_18 = arith.constant dense<0.000000e+00> : vector<8x64xf32>
    %45 = tpu.matmul %42, %44, %cst_18 {dimension_numbers = #tpu.dot_dimension_numbers<[1], [0], [0], [1], [0, 0, 1, 1], [], []>} : vector<8x72xbf16>, vector<72x64xbf16>, vector<8x64xf32> -> vector<8x64xf32>
    %46 = vector.extract_strided_slice %41 {offsets = [1, 0], sizes = [8, 72], strides = [1, 1]} : vector<10x72xbf16> to vector<8x72xbf16>
    %c1_19 = arith.constant 1 : index
    %c0_20 = arith.constant 0 : index
    %c0_21 = arith.constant 0 : index
    %47 = vector.load %arg5[%c1_19, %c0_20, %c0_21] : memref<3x72x64xbf16, #tpu.memory_space<vmem>>, vector<1x72x64xbf16>
    %48 = vector.shape_cast %47 : vector<1x72x64xbf16> to vector<72x64xbf16>
    %cst_22 = arith.constant dense<0.000000e+00> : vector<8x64xf32>
    %49 = tpu.matmul %46, %48, %cst_22 {dimension_numbers = #tpu.dot_dimension_numbers<[1], [0], [0], [1], [0, 0, 1, 1], [], []>} : vector<8x72xbf16>, vector<72x64xbf16>, vector<8x64xf32> -> vector<8x64xf32>
    %50 = arith.addf %45, %49 : vector<8x64xf32>
    %51 = vector.extract_strided_slice %41 {offsets = [2, 0], sizes = [8, 72], strides = [1, 1]} : vector<10x72xbf16> to vector<8x72xbf16>
    %c2_23 = arith.constant 2 : index
    %c0_24 = arith.constant 0 : index
    %c0_25 = arith.constant 0 : index
    %52 = vector.load %arg5[%c2_23, %c0_24, %c0_25] : memref<3x72x64xbf16, #tpu.memory_space<vmem>>, vector<1x72x64xbf16>
    %53 = vector.shape_cast %52 : vector<1x72x64xbf16> to vector<72x64xbf16>
    %cst_26 = arith.constant dense<0.000000e+00> : vector<8x64xf32>
    %54 = tpu.matmul %51, %53, %cst_26 {dimension_numbers = #tpu.dot_dimension_numbers<[1], [0], [0], [1], [0, 0, 1, 1], [], []>} : vector<8x72xbf16>, vector<72x64xbf16>, vector<8x64xf32> -> vector<8x64xf32>
    %55 = arith.addf %50, %54 : vector<8x64xf32>
    %c0_27 = arith.constant 0 : index
    %c0_28 = arith.constant 0 : index
    %56 = vector.load %arg6[%c0_27, %c0_28] : memref<1x64xf32, #tpu.memory_space<vmem>>, vector<1x64xf32>
    %57 = vector.shape_cast %56 : vector<1x64xf32> to vector<64xf32>
    %58 = vector.shape_cast %57 : vector<64xf32> to vector<1x64xf32>
    %59 = vector.broadcast %58 : vector<1x64xf32> to vector<8x64xf32>
    %60 = arith.addf %55, %59 : vector<8x64xf32>
    %61 = vector.extract_strided_slice %4 {offsets = [2, 4], sizes = [8, 64], strides = [1, 1]} : vector<12x72xbf16> to vector<8x64xbf16>
    %62 = arith.extf %61 : vector<8x64xbf16> to vector<8x64xf32>
    %63 = arith.addf %60, %62 : vector<8x64xf32>
    %cst_29 = arith.constant 0.000000e+00 : f32
    %64 = vector.broadcast %cst_29 : f32 to vector<8x64xf32>
    %65 = arith.maximumf %63, %64 : vector<8x64xf32>
    %66 = vector.shape_cast %65 : vector<8x64xf32> to vector<1x8x64xf32>
    %c0_30 = arith.constant 0 : index
    %c0_31 = arith.constant 0 : index
    %c0_32 = arith.constant 0 : index
    %67 = vector.load %arg7[%c0_30, %c0_31, %c0_32] : memref<1x8x64xf32, #tpu.memory_space<vmem>>, vector<1x8x64xf32>
    tpu.vector_store %arg7[%c0_30, %c0_31, %c0_32], %66 {strides = array<i32>} : memref<1x8x64xf32, #tpu.memory_space<vmem>>, vector<1x8x64xf32>,
    return
  }
  func.func @transform_0(%arg0: i32, %arg1: i32) -> (i32, i32, i32) {
    %c0_i32 = arith.constant 0 : i32
    %c0_i32_0 = arith.constant 0 : i32
    %c0_i32_1 = arith.constant 0 : i32
    return %arg0, %c0_i32, %c0_i32_0 : i32, i32, i32
  }
  func.func @transform_1(%arg0: i32, %arg1: i32) -> (i32, i32, i32) {
    %c0_i32 = arith.constant 0 : i32
    %c0_i32_0 = arith.constant 0 : i32
    %c0_i32_1 = arith.constant 0 : i32
    %c0_i32_2 = arith.constant 0 : i32
    return %c0_i32, %c0_i32_0, %c0_i32_1 : i32, i32, i32
  }
  func.func @transform_2(%arg0: i32, %arg1: i32) -> (i32, i32) {
    %c0_i32 = arith.constant 0 : i32
    %c0_i32_0 = arith.constant 0 : i32
    %c0_i32_1 = arith.constant 0 : i32
    return %c0_i32, %c0_i32_0 : i32, i32
  }
  func.func @transform_3(%arg0: i32, %arg1: i32) -> (i32, i32, i32) {
    %c0_i32 = arith.constant 0 : i32
    %c0_i32_0 = arith.constant 0 : i32
    %c0_i32_1 = arith.constant 0 : i32
    %c0_i32_2 = arith.constant 0 : i32
    return %c0_i32, %c0_i32_0, %c0_i32_1 : i32, i32, i32
  }
  func.func @transform_4(%arg0: i32, %arg1: i32) -> (i32, i32) {
    %c0_i32 = arith.constant 0 : i32
    %c0_i32_0 = arith.constant 0 : i32
    %c0_i32_1 = arith.constant 0 : i32
    return %c0_i32, %c0_i32_0 : i32, i32
  }
  func.func @transform_5(%arg0: i32, %arg1: i32) -> (i32, i32, i32) {
    %c0_i32 = arith.constant 0 : i32
    %c0_i32_0 = arith.constant 0 : i32
    return %arg0, %arg1, %c0_i32 : i32, i32, i32
  }
}

</mosaic_0001>

<bundles_post_ra>
// kernel: tpu_custom_call.1
= control target key start
LH: loop header
LB: loop body
LE: loop exit
PB: predicated region body
PF: predicated region fallthrough
CT: control target
= control target key end

     0   :  { %s2136_s0 = inlined_call_operand.hbm [shape: bf16[2,20,72], index: 0, kind: input, shape index: {}]   ;;  %s2137_s1 = inlined_call_operand.hbm [shape: bf16[3,72,64], index: 1, kind: input, shape index: {}]   ;;  %s2138_s2 = inlined_call_operand.hbm [shape: f32[1,64], index: 2, kind: input, shape index: {}]   ;;  %s2139_s3 = inlined_call_operand.hbm [shape: bf16[3,72,64], index: 3, kind: input, shape index: {}]   ;;  %s2140_s4 = inlined_call_operand.hbm [shape: f32[1,64], index: 4, kind: input, shape index: {}]   ;;  %s2141_s5 = inlined_call_operand.hbm [shape: f32[2,16,64], index: 5, kind: output, shape index: {}]  }
   0x1   :  { %2155 = sst [smem:[#allocation21_spill]] %s2137_s1 }
   0x2   :  { %2156 = sst [smem:[#allocation22_spill]] %s2138_s2 }
   0x3   :  { %2157 = sst [smem:[#allocation23_spill]] %s2141_s5 }
   0x4   :  { %10 = vsyncpa [#allocation3], 0 }
   0x5   :  { %12 = vsyncpa [#allocation3 + $0x1], 0 }
   0x6   :  { %13 = vsyncpa [#allocation6], 0 }
   0x7   :  { %14 = vsyncpa [#allocation9], 0 }
   0x8   :  { %15 = vsyncpa [#allocation4], 0 }
   0x9   :  { %17 = vsyncpa [#allocation4 + $0x1], 0  ;;  %s1725_s18 = smov 0   ;;  %s1727_s19 = smov 0  }
   0xa   :  { %s1729_s20 = smov 0   ;;  %s1731_s21 = smov 0  }
   0xb   :  { %s1733_s22 = smov 0   ;;  %s1735_s23 = smov 0  }
   0xc   :  { %s1737_s24 = smov 0   ;;  %s1739_s25 = smov 0  }
   0xd   :  { %s1741_s26 = smov 0   ;;  %s1743_s27 = smov 0  }
   0xe   :  { %s1745_s28 = smov 0  }
   0xf LB: > { %2158 = sst [smem:[#allocation16_spill]] %s1641_s18  ;;  %s1044_s29 = sadd.s32 4294967295, %s1681_s28   ;;  %s1681_s28 = sphi %s1745_s28, %s23_s28   ;;  %s1677_s27 = sphi %s1743_s27, %s2196_s27   ;;  %s1673_s26 = sphi %s1741_s26, %s2195_s26   ;;  %s1669_s25 = sphi %s1739_s25, %s2194_s25   ;;  %s1665_s24 = sphi %s1737_s24, %s2193_s24   ;;  %s1661_s23 = sphi %s1735_s23, %s2192_s23   ;;  %s1657_s22 = sphi %s1733_s22, %s2191_s22   ;;  %s1653_s21 = sphi %s1731_s21, %s2190_s21   ;;  %s1649_s20 = sphi %s1729_s20, %s2189_s20   ;;  %s1645_s19 = sphi %s1727_s19, %s2188_s19   ;;  %s1641_s18 = sphi %s1725_s18, %s2187_s18  }
  0x10   : > { %2159 = sst [smem:[#allocation17_spill]] %s1645_s19  ;;  %s1045_s30 = sadd.s32 4294967294, %s1681_s28  }
  0x11   : > { %2160 = sst [smem:[#allocation18_spill]] %s1669_s25  ;;  %p55_p0 = scmp.ne.s32.totalorder %s1657_s22, %s1653_s21 }
  0x12   : > { %p1781_p1 = scmp.eq.s32.totalorder %s1044_s29, 0  ;;  %p164_p2 = scmp.ne.s32.totalorder %s1649_s20, %s1645_s19 }
  0x13   : > { %p165_p3 = scmp.eq.s32.totalorder %s1044_s29, 3  ;;  %p170_p5 = scmp.ne.s32.totalorder %s1645_s19, %s1641_s18 }
  0x14   : > { %s2161_s6 = scalar_select %p1781_p1, 1, 0 }
  0x15   : > { %p1789_p4 = por %p1781_p1, %p55_p0  ;;  %p1795_p6 = por %p165_p3, %p164_p2 }
  0x16   : > { %p171_p7 = scmp.eq.s32.totalorder %s1045_s30, 3  ;;  %p1046_p8 = scmp.ge.s32.totalorder %s1681_s28, 1 }
  0x17   : > { %s2162_s7 = scalar_select %p1789_p4, 1, 0 }
  0x18   : > { %s2163_s8 = scalar_select %p1795_p6, 1, 0 }
  0x19   : > { %p178_p9 = scmp.lt.s32.totalorder %s1681_s28, 5  ;;  %p1801_p10 = por %p171_p7, %p170_p5 }
  0x1a   : > { %2164 = sst [smem:[#allocation19_spill]] %s2163_s8  ;;  %s1683_s11 = smov [#allocation5]  }
  0x1b   : > { %s2165_s9 = scalar_select %p1801_p10, 1, 0 }
  0x1c   : > { %p1805_p11 = pnand %p1046_p8, %p178_p9  ;;  %s190_s12 = sshll.u32 %s1683_s11, 4  ;;  %s191_s12 = int_to_ptr.vmem [resolvable:$true] %s190_s12 }
  0x1d   : > { %2166 = sst [smem:[#allocation20_spill]] %s2165_s9  ;;  %s1684_s14 = smov [#allocation8]  }
  0x1e   : > { %s2167_s10 = scalar_select %p1805_p11, 1, 0 }
  0x1f   : > { %p1249_p12 = pneg %p1805_p11  ;;  %s214_s15 = sshll.u32 %s1684_s14, 4  ;;  %s1817_s15 = int_to_ptr.vmem [resolvable:$true] %s214_s15 }
  0x20   : > { %s2169_s1 = sld [smem:[#allocation21_spill]] }
  0x21   : > { %p1813_p13 = pnand %p1249_p12, %p1781_p1 }
  0x23   : > { %p1827_p2 = pneg %p1813_p13 }
  0x26   : > { %s1409_s21 = scalar_lea.hbm %s2169_s1, 1728 }
  0x27   : > { %p1410_p0 = scmp.ne.s32.totalorder %s2169_s1, %s1409_s21  ;;  %p1416_p7 = scmp.lt.u32.totalorder %s1409_s21, %s2169_s1 }
  0x29   : > { %p1412_p3 = pnand %p1827_p2, %p1410_p0 }
  0x2b   : > { %p1413_p5 = pneg %p1412_p3 }
  0x2d   : > { %p1418_p8 = pnand %p1416_p7, %p1413_p5 }
  0x2f   : > { %1421 = shalt.err (!%p1418_p8)
}
  0x30   : > { %s1422_s16 = scalar_lea.vmem %s191_s12, 1728  ;;  %p1430_p6 = scmp.lt.s32.totalorder %s191_s12, %s191_s12 }
  0x31   : > { %p1423_p9 = scmp.ne.s32.totalorder %s191_s12, %s1422_s16  ;;  %p1431_p1 = scmp.lt.s32.totalorder %s1422_s16, %s1422_s16 }
  0x33   : > { %p1425_p12 = pnand %p1423_p9, %p1827_p2  ;;  %p1432_p4 = por %p1431_p1, %p1430_p6 }
  0x35   : > { %p1426_p10 = pneg %p1425_p12 }
  0x37   : > { %p1433_p11 = pnand %p1432_p4, %p1426_p10 }
  0x39   : > { %1436 = shalt.err (!%p1433_p11)
}
  0x3a   : > { %s2153_s17 = smov 64   ;;  %s2154_s29 = smov 4  }
  0x3b   : > { %1252 = dma.hbm_to_vmem [thread:$0]  (!%p1813_p13), %s2169_s1, 1728, %s191_s12, [#allocation6], %s2153_s17, %s2153_s17, %s2154_s29  }
  0x3c   : > { %s1437_s18 = scalar_lea.hbm %s2139_s3, 1728 }
  0x3d   : > { %p1438_p1 = scmp.ne.s32.totalorder %s2139_s3, %s1437_s18  ;;  %p1444_p10 = scmp.lt.u32.totalorder %s1437_s18, %s2139_s3 }
  0x3f   : > { %p1440_p4 = pnand %p1438_p1, %p1827_p2 }
  0x41   : > { %p1441_p6 = pneg %p1440_p4 }
  0x43   : > { %p1446_p11 = pnand %p1444_p10, %p1441_p6 }
  0x45   : > { %1449 = shalt.err (!%p1446_p11)
}
  0x46   : > { %s1450_s12 = scalar_lea.vmem %s1817_s15, 1728  ;;  %p1458_p7 = scmp.lt.s32.totalorder %s1817_s15, %s1817_s15 }
  0x47   : > { %p1451_p0 = scmp.ne.s32.totalorder %s1817_s15, %s1450_s12  ;;  %p1459_p8 = scmp.lt.s32.totalorder %s1450_s12, %s1450_s12 }
  0x49   : > { %p1453_p3 = pnand %p1451_p0, %p1827_p2  ;;  %p1460_p9 = por %p1459_p8, %p1458_p7 }
  0x4b   : > { %p1454_p5 = pneg %p1453_p3 }
  0x4d   : > { %p1461_p12 = pnand %p1460_p9, %p1454_p5 }
  0x4f   : > { %1464 = shalt.err (!%p1461_p12)
}
  0x50   : > { %1258 = dma.hbm_to_vmem [thread:$0]  (!%p1813_p13), %s2139_s3, 1728, %s1817_s15, [#allocation9], %s2153_s17, %s2153_s17, %s2154_s29  }
  0x51   : > { %s1687_s25 = smov [#allocation7]   ;;  %s1688_s9 = smov [#allocation10]  }
  0x52   : > { %s204_s8 = sshll.u32 %s1687_s25, 4  ;;  %s228_s21 = sshll.u32 %s1688_s9, 4  ;;  %s205_s8 = int_to_ptr.vmem [resolvable:$true] %s204_s8  ;;  %s229_s21 = int_to_ptr.vmem [resolvable:$true] %s228_s21 }
  0x53   : > { %s2171_s2 = sld [smem:[#allocation22_spill]] }
  0x59   : > { %s1465_s16 = scalar_lea.hbm %s2171_s2, 16 }
  0x5a   : > { %p1466_p1 = scmp.ne.s32.totalorder %s2171_s2, %s1465_s16  ;;  %p1472_p10 = scmp.lt.u32.totalorder %s1465_s16, %s2171_s2 }
  0x5c   : > { %p1468_p4 = pnand %p1466_p1, %p1827_p2 }
  0x5e   : > { %p1469_p6 = pneg %p1468_p4 }
  0x60   : > { %p1474_p11 = pnand %p1472_p10, %p1469_p6 }
  0x62   : > { %1477 = shalt.err (!%p1474_p11)
}
  0x63   : > { %s1478_s15 = scalar_lea.vmem %s205_s8, 16  ;;  %s1485_s18 = scalar_lea.vmem %s205_s8, 32 }
  0x64   : > { %p1479_p0 = scmp.ne.s32.totalorder %s205_s8, %s1478_s15  ;;  %p1486_p7 = scmp.lt.s32.totalorder %s205_s8, %s205_s8 }
  0x65   : > { %p1487_p8 = scmp.lt.s32.totalorder %s1485_s18, %s1478_s15 }
  0x66   : > { %p1481_p3 = pnand %p1479_p0, %p1827_p2 }
  0x67   : > { %p1488_p9 = por %p1487_p8, %p1486_p7 }
  0x68   : > { %p1482_p5 = pneg %p1481_p3 }
  0x6a   : > { %p1489_p12 = pnand %p1488_p9, %p1482_p5 }
  0x6c   : > { %1492 = shalt.err (!%p1489_p12)
}
  0x6d   : > { %1255 = dma.hbm_to_vmem [thread:$0]  (!%p1813_p13), %s2171_s2, 16, %s205_s8, [#allocation6]  }
  0x6e   : > { %s1493_s30 = scalar_lea.hbm %s2140_s4, 16 }
  0x6f   : > { %p1494_p1 = scmp.ne.s32.totalorder %s2140_s4, %s1493_s30  ;;  %p1500_p10 = scmp.lt.u32.totalorder %s1493_s30, %s2140_s4 }
  0x71   : > { %p1496_p4 = pnand %p1494_p1, %p1827_p2 }
  0x73   : > { %p1497_p6 = pneg %p1496_p4 }
  0x75   : > { %p1502_p11 = pnand %p1500_p10, %p1497_p6 }
  0x77   : > { %1505 = shalt.err (!%p1502_p11)
}
  0x78   : > { %s1506_s15 = scalar_lea.vmem %s229_s21, 16  ;;  %s1513_s8 = scalar_lea.vmem %s229_s21, 32 }
  0x79   : > { %p1507_p0 = scmp.ne.s32.totalorder %s229_s21, %s1506_s15  ;;  %p1514_p7 = scmp.lt.s32.totalorder %s229_s21, %s229_s21 }
  0x7a   : > { %p1515_p8 = scmp.lt.s32.totalorder %s1513_s8, %s1506_s15 }
  0x7b   : > { %p1509_p3 = pnand %p1507_p0, %p1827_p2 }
  0x7c   : > { %p1516_p9 = por %p1515_p8, %p1514_p7 }
  0x7d   : > { %p1510_p5 = pneg %p1509_p3 }
  0x7f   : > { %p1517_p12 = pnand %p1516_p9, %p1510_p5 }
  0x81   : > { %1520 = shalt.err (!%p1517_p12)
}
  0x82   : > { %1261 = dma.hbm_to_vmem [thread:$0]  (!%p1813_p13), %s2140_s4, 16, %s229_s21, [#allocation9]  }
  0x83   : > { %s32_s11 = sadd.s32 1, %s1673_s26  ;;  %s35_s13 = sadd.s32 1, %s1677_s27 }
  0x84   : > { %p33_p2 = scmp.ge.s32.totalorder %s32_s11, 2  ;;  %s42_s25 = sadd.s32 1, %s1661_s23 }
  0x85   : > { %p49_p1 = scmp.ne.s32.totalorder %s1661_s23, %s1657_s22  ;;  %p50_p4 = scmp.eq.s32.totalorder %s1681_s28, 0 }
  0x86   : > { %s2198_s11 = smov (%p33_p2, %s32_s11), 0  ;;  %s2200_s13 = smov (!%p33_p2, %s35_s13), %s1677_s27 }
  0x87   : > { %s150_s19 = ssub.s32 %s1673_s26, %s2198_s11  ;;  %p37_p6 = scmp.ge.s32.totalorder %s2200_s13, 2 }
  0x88   : > { %s154_s9 = sadd.s32 1, %s1649_s20  ;;  %p1920_p10 = por %p50_p4, %p49_p1 }
  0x89   : > { %p1274_p13 = scmp.lt.s32.totalorder %s1681_s28, 4  ;;  %s2202_s13 = smov (%p37_p6, %s2200_s13), 0 }
  0x8a   : > { %s239_s30 = sand.u32 1, %s1661_s23   ;;  %s1227_s14 = smul.u32 192, %s1677_s27 }
  0x8b   : > { %s39_s16 = ssub.s32 %s1677_s27, %s2202_s13  ;;  %s1226_s5 = smul.u32 12, %s239_s30 }
  0x8c   : > { %p40_p11 = scmp.eq.s32.totalorder %s39_s16, 0  ;;  %s151_s12 = sor.u32 %s150_s19, %s39_s16 }
  0x8d   : > { %p152_p0 = scmp.eq.s32.totalorder %s151_s12, 0  ;;  %s1940_s17 = scalar_lea.hbm %s2136_s0, %s1227_s14 }
  0x8e   : > { %s1932_s15 = scalar_select %p40_p11, %s1661_s23, %s42_s25  }
  0x8f   : > { %s1935_s8 = scalar_select %p152_p0, %s1649_s20, %s154_s9  }
  0x90   : > { %s243_s29 = scalar_lea.vmem [#allocation2], %s1226_s5  ;;  %p1946_p3 = pnand %p1274_p13, %p1920_p10 }
  0x91   : > { %s250_s2 = sshll.u32 %s243_s29, 4  ;;  %s1952_s25 = scalar_lea.sflag [#allocation3], %s239_s30  ;;  %s1950_s2 = int_to_ptr.vmem [resolvable:$true] %s250_s2 }
  0x92   : > { %s1521_s9 = scalar_lea.hbm %s1940_s17, 192  ;;  %p1523_p7 = pneg %p1946_p3 }
  0x93   : > { %p1522_p5 = scmp.ne.s32.totalorder %s1940_s17, %s1521_s9  ;;  %s1526_s14 = scalar_lea.hbm %s2136_s0, 384 }
  0x94   : > { %p1527_p12 = scmp.lt.u32.totalorder %s1940_s17, %s2136_s0  ;;  %p1528_p2 = scmp.lt.u32.totalorder %s1526_s14, %s1521_s9 }
  0x95   : > { %p1524_p8 = pnand %p1523_p7, %p1522_p5  ;;  %p1530_p4 = scmp.lt.u32.totalorder %s1521_s9, %s1940_s17 }
  0x96   : > { %p1529_p1 = por %p1528_p2, %p1527_p12 }
  0x97   : > { %p1525_p9 = pneg %p1524_p8 }
  0x98   : > { %p1531_p6 = por %p1530_p4, %p1529_p1 }
  0x9a   : > { %p1532_p10 = pnand %p1531_p6, %p1525_p9 }
  0x9c   : > { %1535 = shalt.err (!%p1532_p10)
}
  0x9d   : > { %s1536_s30 = scalar_lea.vmem %s1950_s2, 192  ;;  %s1689_s5 = smov [#allocation2]  }
  0x9e   : > { %p1537_p13 = scmp.ne.s32.totalorder %s1950_s2, %s1536_s30  ;;  %s1541_s18 = sshll.u32 %s1689_s5, 4  ;;  %s1542_s18 = int_to_ptr.vmem [resolvable:$false] %s1541_s18 }
  0x9f   : > { %s1543_s1 = scalar_lea.vmem %s1542_s18, 384  ;;  %p1544_p5 = scmp.lt.s32.totalorder %s1950_s2, %s1542_s18 }
  0xa0   : > { %p1539_p11 = pnand %p1537_p13, %p1523_p7  ;;  %p1545_p8 = scmp.lt.s32.totalorder %s1543_s1, %s1536_s30 }
  0xa2   : > { %p1540_p0 = pneg %p1539_p11  ;;  %p1546_p12 = por %p1545_p8, %p1544_p5 }
  0xa4   : > { %p1547_p2 = pnand %p1546_p12, %p1540_p0 }
  0xa6   : > { %1550 = shalt.err (!%p1547_p2)
}
  0xa7   : > { %s2174_s9 = smov 4   ;;  %s2175_s29 = smov 64  }
  0xa8   : > { %1265 = dma.hbm_to_vmem [thread:$0]  (!%p1946_p3), %s1940_s17, 192, %s1950_s2, %s1952_s25, %s2175_s29, %s2175_s29, %s2174_s9  }
  0xa9   : > { %p2176_p7 = scmp.ne.s32.totalorder %s2167_s10, 0 }
  0xaa   : > { %s264_s21 = sand.u32 (!%p2176_p7), 1, %s1657_s22   ;;  %p2177_p9 = scmp.ne.s32.totalorder (!%p2176_p7), %s2162_s7, 0 }
  0xab   : > { %262 = sbr.rel (%p2176_p7) target bundleno = 826 (0x33a), region = 40  ;;  %s265_s16 = scalar_lea.sflag (!%p2176_p7), [#allocation3], %s264_s21 }
  0xac   : > { %s1986_s14 = smul.u32 (!%p2176_p7), 12, %s264_s21 }
  0xae   : > { %s268_s12 = scalar_lea.vmem (!%p2176_p7), [#allocation2], %s1986_s14 }
  0xb2   : > { %1624 = dma.done.wait (%p2177_p9), %s265_s16, 192  }
  0xb3   : > { %1626 = vsyncadd (%p2177_p9), %s265_s16, 4294967104  ;;  %p2178_p1 = scmp.ne.s32.totalorder %s2161_s6, 0 }
  0xb5   : > { %1628 = dma.done.wait (%p2178_p1), [#allocation6], 1744  }
  0xb6   : > { %1630 = vsyncadd (%p2178_p1), [#allocation6], 4294965552 }
  0xb7   : > { %1632 = dma.done.wait (%p2178_p1), [#allocation9], 1744  }
  0xb8   : > { %1634 = vsyncadd (%p2178_p1), [#allocation9], 4294965552  ;;  %v1690_v0 = vmov 0.0   ;;  %vm1691_vm0 = vmmov 0   ;;  %s1059_s2 = sshll.u32 %s1665_s24, 3  ;;  %v1378_v1 = vld [vmem:[#allocation5 + $0x24] sm:$0xff]   ;;  %v597_v46 = vlaneseq }
  0xb9   : > { %1142 = vmatprep.subr.bf16.mxu0 %v1690_v0  ;;  %1156 = vmatprep.subr.bf16.mxu1 %v1690_v0  ;;  %s313_s7 = sshra.s32 %s1059_s2, 3  ;;  %v1379_v2 = vld [vmem:[#allocation5] sm:$0xff]   ;;  %v1380_v3 = vld [vmem:[#allocation5 + $0x2c] sm:$0xff]   ;;  %v1382_v5 = vld [vmem:[#allocation5 + $0x34] sm:$0xff]   ;;  %vm381_vm1 = vcmask 1043456   ;;  %vm377_vm2 = vcmask 588800  }
  0xba   : > { %1152 = vmatprep.mubr.msk.bf16.mxu0 %vm1691_vm0, %v1690_v0  ;;  %1166 = vmatprep.mubr.msk.bf16.mxu1 %vm1691_vm0, %v1690_v0  ;;  %v1381_v4 = vld [vmem:[#allocation5 + $0x8] sm:$0xff]   ;;  %s1060_s6 = sshll.u32 %s313_s7, 2  ;;  %v1383_v6 = vld [vmem:[#allocation5 + $0x10] sm:$0xff]   ;;  %v1384_v7 = vld [vmem:[#allocation5 + $0x3c] sm:$0xff]   ;;  %v598_v47 = vshrl.u32 %v597_v46, 7  ;;  %s1081_s17 = sadd.s32 4294967295, %s1059_s2 }
  0xbb   : > { %1143 = vmatpush3.bf16.msra.mxu0 %v1378_v1  ;;  %1157 = vmatpush3.bf16.msra.mxu1 %v1379_v2  ;;  %s316_s10 = scalar_lea.vmem %s268_s12, %s1060_s6 [#allocation2]  ;;  %v1385_v8 = vld [vmem:[#allocation5 + $0x18] sm:$0xff]   ;;  %v1386_v11 = vld [vmem:[#allocation5 + $0x44] ss:$0 sps:$4 sm:$0xff]   ;;  %v1387_v13 = vld [vmem:[#allocation5 + $0x20] ss:$0 sps:$4 sm:$0xff]   ;;  %v601_v49 = vstv %s1081_s17  ;;  %s1692_s19 = smov 4  }
  0xbc   : > { %1144 = vmatprep.subr.bf16.mxu0 %v1690_v0  ;;  %1158 = vmatprep.subr.bf16.mxu1 %v1690_v0  ;;  %v2014_v9 = vld [vmem:[%s316_s10] sm:$0xf]  ;;  %v2016_v10 = vld [vmem:[%s316_s10 + $0x4] sm:$0x3]  ;;  %v383_v16 = vsel %vm381_vm1, %v1386_v11, 0  ;;  %v456_v18 = vsel %vm381_vm1, %v1387_v13, 0  ;;  %v602_v50 = vadd.s32 %v601_v49, %v598_v47 }
  0xbd   : > { %v1061_v12 = vcombine.low %v2014_v9, %v2016_v10  ;;  %v1389_v19 = vld [vmem:[#allocation5 + $0x48] sm:$0xff]   ;;  %v1390_v21 = vld [vmem:[#allocation5 + $0x50] sm:$0xff]   ;;  %v1391_v22 = vld [vmem:[#allocation5 + $0x58] sm:$0xff]   ;;  %v599_v48 = vadd.s32 8, %v598_v47  ;;  %vm894_vm9 = vcmask 1045504   ;;  %s1693_s25 = smov 124  }
  0xbe   : > { %v1392_v23 = vld [vmem:[#allocation5 + $0x60] sm:$0xff]   ;;  %v1393_v24 = vld [vmem:[#allocation5 + $0x68] ss:$0 sps:$4 sm:$0xff]   ;;  %v1394_v27 = vld [vmem:[#allocation8] sm:$0xff]   ;;  %vm604_vm3 = vcmp.ge.s32.totalorder %v602_v50, 0  ;;  %vm606_vm5 = vcmp.lt.s32.totalorder %v602_v50, 16 }
  0xbf   : > { %1145 = vmatpush3.bf16.msra.mxu0 %v1380_v3  ;;  %1159 = vmatpush3.bf16.msra.mxu1 %v1381_v4  ;;  %v346_v14 = vshll.u32 %v1061_v12, 16  ;;  %v344_v15 = vshrl.u32 %v1061_v12, 16  ;;  %v541_v25 = vsel %vm381_vm1, %v1393_v24, 0  ;;  %v509_v26 = vrot.slane %v1061_v12, 1  ;;  %v1396_v28 = vld [vmem:[#allocation8 + $0x24] sm:$0xff]   ;;  %v1398_v30 = vld [vmem:[#allocation8 + $0x2c] sm:$0xff]   ;;  %vm608_vm7 = vmand %vm604_vm3, %vm606_vm5 }
  0xc0   : > { %1146 = vmatprep.subr.bf16.mxu0 %v1690_v0  ;;  %1160 = vmatprep.subr.bf16.mxu1 %v1690_v0  ;;  %v1395_v29 = vld [vmem:[#allocation8 + $0x8] sm:$0xff]   ;;  %v1397_v31 = vld [vmem:[#allocation8 + $0x10] sm:$0xff]   ;;  %v1399_v33 = vld [vmem:[#allocation8 + $0x18] sm:$0xff]   ;;  %v603_v51 = vadd.s32 %v601_v49, %v599_v48  ;;  %vm620_vm10 = vcmask 31744   ;;  %vm624_vm11 = vcmask 556032   ;;  %s2179_s30 = sld [smem:[#allocation17_spill]] }
  0xc1   : > { %v348_v17 = vrot.slane %v346_v14, 1  ;;  %v1400_v32 = vld [vmem:[#allocation8 + $0x34] sm:$0xff]   ;;  %v1401_v34 = vld [vmem:[#allocation8 + $0x20] ss:$0 sps:$4 sm:$0xff]   ;;  %v1080_v54 = vld [vmem:[#allocation7] ss:$0 sm:$0xff] }
  0xc2   : > { %v754_v35 = vsel %vm381_vm1, %v1401_v34, 0  ;;  %v1402_v52 = vld [vmem:[#allocation8 + $0x3c] sm:$0xff]   ;;  %v1403_v57 = vld [vmem:[#allocation8 + $0x44] ss:$0 sps:$4 sm:$0xff]   ;;  %vm605_vm4 = vcmp.ge.s32.totalorder %v603_v51, 0  ;;  %vm607_vm6 = vcmp.lt.s32.totalorder %v603_v51, 16 }
  0xc3   : > { %1147 = vmatpush3.bf16.msra.mxu0 %v1382_v5  ;;  %1161 = vmatpush3.bf16.msra.mxu1 %v1383_v6  ;;  %v349_v20 = vor.u32 %v348_v17, %v344_v15  ;;  %v682_v62 = vsel %vm381_vm1, %v1403_v57, 0  ;;  %vm609_vm8 = vmand %vm605_vm4, %vm607_vm6  ;;  %v890_v6 = vunpack.c.l.bf16 %v2014_v9  ;;  %s2180_s5 = sld [smem:[#allocation18_spill]]  ;;  %v1100_v34 = vld [vmem:[#allocation10] ss:$0 sm:$0xff]  ;;  %s2181_s21 = sld [smem:[#allocation19_spill]]  ;;  %vm903_vm12 = vcmask 523264  }
  0xc4   : > { %1148 = vmatprep.subr.bf16.mxu0 %v1690_v0  ;;  %1162 = vmatprep.subr.bf16.mxu1 %v1690_v0  ;;  %s2182_s6 = sld [smem:[#allocation23_spill]] }
  0xc6   : > { %s308_s18 = sand.u32 1, %s2179_s30  }
  0xc7   : > { %1149 = vmatpush3.bf16.msra.mxu0 %v1384_v7  ;;  %1163 = vmatpush3.bf16.msra.mxu1 %v1385_v8  ;;  %v891_v7 = vunpack.c.l.bf16 %v2016_v10  ;;  %v895_v8 = vrot.slane %v890_v6, 2  ;;  %v1405_v10 = vld [vmem:[#allocation8 + $0x50] sm:$0xff]   ;;  %s1058_s1 = sshll.u32 %s308_s18, 3 }
  0xc8   : > { %1150 = vmatprep.subr.bf16.mxu0 %v1690_v0  ;;  %1164 = vmatprep.subr.bf16.mxu1 %v1690_v0  ;;  %s310_s16 = scalar_lea.vmem [#allocation11], %s1058_s1 }
  0xc9   : > { %v896_v11 = vrot.slane %v891_v7, 2  ;;  %s1102_s9 = sshll.u32 %s2180_s5, 1  ;;  %s921_s12 = sshll.u32 %s310_s16, 4  ;;  %s2076_s12 = int_to_ptr.vmem [resolvable:$true] %s921_s12 }
  0xca   : > { %s917_s29 = sadd.s32 %s1665_s24, %s1102_s9  ;;  %s906_s24 = scalar_lea.sflag [#allocation4], %s308_s18 }
  0xcb   : > { %1151 = vmatpush3.bf16.msra.mxu0 %v383_v16  ;;  %1165 = vmatpush3.bf16.msra.mxu1 %v456_v18  ;;  %s1103_s14 = sshll.u32 %s917_s29, 7  ;;  %s1551_s17 = scalar_lea.vmem %s2076_s12, 128 }
  0xcc   : > { %1170 = vmatprep.subr.bf16.mxu0 %v1690_v0  ;;  %1184 = vmatprep.subr.bf16.mxu1 %v1690_v0  ;;  %s2074_s10 = scalar_lea.hbm %s2182_s6, %s1103_s14  ;;  %p1552_p3 = scmp.ne.s32.totalorder %s2076_s12, %s1551_s17 }
  0xcd   : > { %p2183_p4 = scmp.ne.s32.totalorder %s2181_s21, 0 }
  0xce   : > { %1153 = vmatmul.mubr.msk.bf16.vlgmr.msra.gmra.mrb[0].mxu0 %vm377_vm2, %v349_v20  ;;  %1167 = vmatmul.mubr.msk.bf16.vlgmr.msra.gmra.mrb[0].mxu1 %vm377_vm2, %v1061_v12  ;;  %v897_v12 = vsel %vm894_vm9, %v895_v8, %v896_v11  ;;  %v1406_v20 = vld [vmem:[#allocation8 + $0x58] sm:$0xff]  }
  0xcf   : > { %1171 = vmatpush3.bf16.msra.mxu0 %v1389_v19  ;;  %1180 = vmatprep.mubr.msk.bf16.mxu0 %vm1691_vm0, %v1690_v0  ;;  %v1404_v19 = vld [vmem:[#allocation8 + $0x48] sm:$0xff]   ;;  %p1553_p6 = pnand %p1552_p3, %p2183_p4 }
  0xd0   : > { %1172 = vmatprep.subr.bf16.mxu0 %v1690_v0  ;;  %1194 = vmatprep.mubr.msk.bf16.mxu1 %vm1691_vm0, %v1690_v0 }
  0xd1   : > { %1185 = vmatpush3.bf16.msra.mxu1 %v1396_v28  ;;  %p1554_p10 = pneg %p1553_p6 }
  0xd2   : > { %1186 = vmatprep.subr.bf16.mxu1 %v1690_v0 }
  0xd3   : > { %1173 = vmatpush3.bf16.msra.mxu0 %v1390_v21  ;;  %v1407_v21 = vld [vmem:[#allocation8 + $0x60] sm:$0xff]  }
  0xd4   : > { %1174 = vmatprep.subr.bf16.mxu0 %v1690_v0 }
  0xd5   : > { %1187 = vmatpush3.bf16.msra.mxu1 %v1398_v30 }
  0xd6   : > { %1188 = vmatprep.subr.bf16.mxu1 %v1690_v0 }
  0xd7   : > { %1175 = vmatpush3.bf16.msra.mxu0 %v1391_v22  ;;  %v1408_v22 = vld [vmem:[#allocation8 + $0x68] ss:$0 sps:$4 sm:$0xff]  }
  0xd8   : > { %1176 = vmatprep.subr.bf16.mxu0 %v1690_v0 }
  0xd9   : > { %1189 = vmatpush3.bf16.msra.mxu1 %v1400_v32 }
  0xda   : > { %1190 = vmatprep.subr.bf16.mxu1 %v1690_v0 }
  0xdb   : > { %1177 = vmatpush3.bf16.msra.mxu0 %v1392_v23  ;;  %v839_v23 = vsel %vm381_vm1, %v1408_v22, 0 }
  0xdc   : > { %1178 = vmatprep.subr.bf16.mxu0 %v1690_v0 }
  0xdd   : > { %1191 = vmatpush3.bf16.msra.mxu1 %v1402_v52 }
  0xde   : > { %1192 = vmatprep.subr.bf16.mxu1 %v1690_v0 }
  0xdf   : > { %1179 = vmatpush3.bf16.msra.mxu0 %v541_v25 }
  0xe0   : > { %1198 = vmatprep.subr.bf16.mxu0 %v1690_v0 }
  0xe1   : > { %1193 = vmatpush3.bf16.msra.mxu1 %v682_v62 }
  0xe2   : > { %1181 = vmatmul.mubr.msk.bf16.vlgmr.msra.gmra.mrb[4].mxu0 %vm377_vm2, %v509_v26  ;;  %1212 = vmatprep.subr.bf16.mxu1 %v1690_v0 }
  0xe3   : > { %1208 = vmatprep.mubr.msk.bf16.mxu0 %vm1691_vm0, %v1690_v0  ;;  %1199 = vmatpush3.bf16.msra.mxu0 %v1394_v27 }
  0xe4   : > { %1200 = vmatprep.subr.bf16.mxu0 %v1690_v0 }
  0xe7   : > { %1201 = vmatpush3.bf16.msra.mxu0 %v1395_v29 }
  0xe8   : > { %1202 = vmatprep.subr.bf16.mxu0 %v1690_v0 }
  0xeb   : > { %1203 = vmatpush3.bf16.msra.mxu0 %v1397_v31 }
  0xec   : > { %1204 = vmatprep.subr.bf16.mxu0 %v1690_v0 }
  0xef   : > { %1205 = vmatpush3.bf16.msra.mxu0 %v1399_v33 }
  0xf0   : > { %1206 = vmatprep.subr.bf16.mxu0 %v1690_v0 }
  0xf3   : > { %1207 = vmatpush3.bf16.msra.mxu0 %v754_v35 }
 0x1a1   : > { %v419_v36 = vpop.f32.mrb[0].mxu0  ;;  %v492_v37 = vpop.f32.mrb[0].mxu1 }
 0x1a2   : > { %v1154_v38 = vpop.f32.mrb[1].mxu0  ;;  %v493_v39 = vadd.f32 %v492_v37, %v419_v36  ;;  %v1168_v40 = vpop.f32.mrb[1].mxu1 }
 0x1a3   : > { %v422_v41 = vpop.f32.mrb[2].mxu0  ;;  %v495_v42 = vpop.f32.mrb[2].mxu1 }
 0x1a4   : > { %v1155_v43 = vpop.f32.mrb[3].mxu0  ;;  %v496_v44 = vadd.f32 %v495_v42, %v422_v41  ;;  %v1169_v45 = vpop.f32.mrb[3].mxu1 }
 0x1b5   : > { %v577_v53 = vpop.f32.mrb[4].mxu0 }
 0x1b6   : > { %v584_v55 = vadd.f32 %v577_v53, %v493_v39  ;;  %v1182_v56 = vpop.f32.mrb[5].mxu0 }
 0x1b7   : > { %v580_v58 = vpop.f32.mrb[6].mxu0 }
 0x1b8   : > { %v593_v59 = vadd.f32 %v1080_v54, %v584_v55  ;;  %v585_v60 = vadd.f32 %v580_v58, %v496_v44  ;;  %v1183_v61 = vpop.f32.mrb[7].mxu0 }
 0x1ba   : > { %v595_v63 = vmax.f32 %v593_v59, 0.0  ;;  %v594_v1 = vadd.f32 %v1080_v54, %v585_v60 }
 0x1bc   : > { %v596_v2 = vmax.f32 %v594_v1, 0.0  ;;  %v614_v3 = vsel %vm608_vm7, %v595_v63, 0.0 }
 0x1be   : > { %v615_v4 = vsel %vm609_vm8, %v596_v2, 0.0 }
 0x1bf   : > { %v616_v5 = vpack.c.bf16 %v615_v4, %v614_v3 }
 0x1c1   : > { %618 = vrot.lane.b32.xlu0 %v616_v5, %s1692_s19  ;;  %s1694_s19 = smov [#allocation11]  }
 0x1c5   : > { %898 = vrot.lane.b32.xlu0 %v897_v12, %s1693_s25  ;;  %s1555_s25 = sshll.u32 %s1694_s19, 4  ;;  %s1556_s25 = int_to_ptr.vmem [resolvable:$false] %s1555_s25 }
 0x1c6   : > { %s1557_s30 = scalar_lea.vmem %s1556_s25, 256  ;;  %p1558_p13 = scmp.lt.s32.totalorder %s2076_s12, %s1556_s25 }
 0x1c7   : > { %p1559_p11 = scmp.lt.s32.totalorder %s1557_s30, %s1551_s17 }
 0x1c9   : > { %p1560_p0 = por %p1559_p11, %p1558_p13 }
 0x1cb   : > { %p1561_p5 = pnand %p1560_p0, %p1554_p10 }
 0x233   : > { %v619_v13 = vpop.permute.xlu0 %618 }
 0x234   : > { %v623_v14 = vsel %vm620_vm10, 0, %v619_v13 }
 0x235   : > { %v625_v15 = vsel %vm624_vm11, %v623_v14, 0 }
 0x236   : > { %v647_v16 = vshll.u32 %v625_v15, 16  ;;  %1209 = vmatmul.mubr.msk.bf16.vlgmr.msra.gmra.mrb[8].mxu0 %vm377_vm2, %v625_v15  ;;  %v645_v17 = vshrl.u32 %v625_v15, 16  ;;  %v807_v24 = vrot.slane %v625_v15, 1 }
 0x237   : > { %v899_v38 = vpop.permute.xlu0 %898 }
 0x238   : > { %v649_v18 = vrot.slane %v647_v16, 1 }
 0x23a   : > { %v650_v9 = vor.u32 %v649_v18, %v645_v17 }
 0x23c   : > { %1195 = vmatmul.mubr.msk.bf16.vlgmr.msra.gmra.mrb[4].mxu1 %vm377_vm2, %v650_v9 }
 0x23d   : > { %1213 = vmatpush3.bf16.msra.mxu1 %v1404_v19  ;;  %1222 = vmatprep.mubr.msk.bf16.mxu1 %vm1691_vm0, %v1690_v0 }
 0x23e   : > { %1214 = vmatprep.subr.bf16.mxu1 %v1690_v0 }
 0x241   : > { %1215 = vmatpush3.bf16.msra.mxu1 %v1405_v10 }
 0x242   : > { %1216 = vmatprep.subr.bf16.mxu1 %v1690_v0 }
 0x245   : > { %1217 = vmatpush3.bf16.msra.mxu1 %v1406_v20 }
 0x246   : > { %1218 = vmatprep.subr.bf16.mxu1 %v1690_v0 }
 0x249   : > { %1219 = vmatpush3.bf16.msra.mxu1 %v1407_v21 }
 0x24a   : > { %1220 = vmatprep.subr.bf16.mxu1 %v1690_v0 }
 0x24d   : > { %1221 = vmatpush3.bf16.msra.mxu1 %v839_v23 }
 0x250   : > { %1223 = vmatmul.mubr.msk.bf16.vlgmr.msra.gmra.mrb[8].mxu1 %vm377_vm2, %v807_v24 }
 0x309   : > { %v790_v25 = vpop.f32.mrb[8].mxu0 }
 0x30a   : > { %v1210_v26 = vpop.f32.mrb[9].mxu0 }
 0x30b   : > { %v793_v27 = vpop.f32.mrb[10].mxu0 }
 0x30c   : > { %v1211_v28 = vpop.f32.mrb[11].mxu0 }
 0x30f   : > { %v718_v29 = vpop.f32.mrb[4].mxu1 }
 0x310   : > { %v791_v30 = vadd.f32 %v790_v25, %v718_v29  ;;  %v1196_v31 = vpop.f32.mrb[5].mxu1 }
 0x311   : > { %v721_v32 = vpop.f32.mrb[6].mxu1 }
 0x312   : > { %v1197_v33 = vpop.f32.mrb[7].mxu1 }
 0x323   : > { %v875_v0 = vpop.f32.mrb[8].mxu1 }
 0x324   : > { %v881_v35 = vadd.f32 %v875_v0, %v791_v30  ;;  %v1224_v36 = vpop.f32.mrb[9].mxu1 }
 0x325   : > { %v878_v37 = vpop.f32.mrb[10].mxu1 }
 0x326   : > { %v1225_v39 = vpop.f32.mrb[11].mxu1  ;;  %v889_v40 = vadd.f32 %v1100_v34, %v881_v35 }
 0x328   : > { %v901_v41 = vadd.f32 %v899_v38, %v889_v40 }
 0x32a   : > { %v902_v42 = vmax.f32 %v901_v41, 0.0 }
 0x32c   : > { %904 = vst.msk [vmem:[%s310_s16] sm:$0xff] %vm903_vm12, %v902_v42 }
 0x32d   : > { %1564 = shalt.err (!%p1561_p5)
}
 0x32e   : > { %s1565_s5 = scalar_lea.hbm %s2074_s10, 128  ;;  %s1569_s9 = scalar_lea.hbm %s2182_s6, 512 }
 0x32f   : > { %p1566_p8 = scmp.ne.s32.totalorder %s2074_s10, %s1565_s5  ;;  %p1570_p7 = scmp.lt.u32.totalorder %s2074_s10, %s2182_s6 }
 0x330   : > { %p1571_p9 = scmp.lt.u32.totalorder %s1569_s9, %s1565_s5  ;;  %p1573_p3 = scmp.lt.u32.totalorder %s1565_s5, %s2074_s10 }
 0x331   : > { %p1567_p12 = pnand %p1566_p8, %p2183_p4 }
 0x332   : > { %p1572_p1 = por %p1571_p9, %p1570_p7 }
 0x333   : > { %p1568_p2 = pneg %p1567_p12 }
 0x334   : > { %p1574_p6 = por %p1573_p3, %p1572_p1 }
 0x336   : > { %p1575_p10 = pnand %p1574_p6, %p1568_p2 }
 0x338   : > { %1578 = shalt.err (!%p1575_p10)
}
 0x339   : > { %1247 = dma.vmem_to_hbm [thread:$0]  (%p2183_p4), %s2076_s12, 128, %s2074_s10, %s906_s24  }
 0x33a PF: > { %s2184_s16 = sld [smem:[#allocation16_spill]]  ;;  %s2185_s2 = sld [smem:[#allocation20_spill]] }
 0x33b   : > { %p1279_p13 = scmp.ge.s32.totalorder %s1681_s28, 2 }
 0x340   : > { %s933_s7 = sand.u32 1, %s2184_s16   ;;  %p2186_p11 = scmp.ne.s32.totalorder %s2185_s2, 0 }
 0x341   : > { %s934_s17 = scalar_lea.sflag [#allocation4], %s933_s7 }
 0x342   : > { %p1267_p0 = pnand %p1279_p13, %p2186_p11 }
 0x344   : > { %1636 = dma.done.wait (!%p1267_p0), %s934_s17, 128  }
 0x345   : > { %1638 = vsyncadd (!%p1267_p0), %s934_s17, 4294967168  ;;  %s23_s28 = sadd.s32 1, %s1681_s28   ;;  %s2187_s18 = sld [smem:[#allocation17_spill]] }
 0x346   : > { %p20_p5 = scmp.ge.s32.totalorder %s23_s28, 6   ;;  %s2188_s19 = smov %s1649_s20 }
 0x347   : > { %s2189_s20 = smov %s1935_s8  ;;  %s2190_s21 = smov %s1657_s22 }
 0x348   : > { %s2191_s22 = smov %s1661_s23  ;;  %s2192_s23 = smov %s1932_s15 }
 0x349   : > { %s2193_s24 = smov %s1673_s26  ;;  %s2194_s25 = smov %s1677_s27 }
 0x34a   : > { %s2195_s26 = smov %s2198_s11  ;;  %s2196_s27 = smov %s2202_s13 }
 0x34b   :  { %22 = sbr.rel (!%p20_p5) target bundleno = 15 (0xf), region = 106 }
 0x352   :  { %939 = vsyncpa [#allocation3], 1 }
 0x353   :  { %941 = vsyncpa [#allocation3 + $0x1], 1 }
 0x354   :  { %942 = vsyncpa [#allocation6], 1 }
 0x355   :  { %943 = vsyncpa [#allocation9], 1 }
 0x356   :  { %944 = vsyncpa [#allocation4], 1 }
 0x357   :  { %946 = vsyncpa [#allocation4 + $0x1], 1 }

</bundles_post_ra>
